<compile_context>
chip_gen: v7x
topology: tpu7x:2x2x1
jax: 0.10.0
libtpu: 0.0.40
codegen_flags: <defaults>
</compile_context>

<pallas_src>
import functools

import jax
import jax.numpy as jnp
from jax import lax
from jax.experimental import pallas as pl
from jax.experimental.pallas import tpu as pltpu

# Worst-case number of simultaneously-live f32 (tile, C) temporaries inside
# the kernel body (ys, yt, shifted copies, yt_exp, diff/product).
_N_F32_TEMPS = 6


def _distill_kl_kernel(temp_ref, ys_ref, yt_ref, out_ref, *,
                       rows_total, tile_rows, mask_rows):
    """One batch tile: write T^2 * sum_rows KL(q_row || p_row) to out block."""
    T = temp_ref[0]
    inv_T = 1.0 / T

    ys = ys_ref[...].astype(jnp.float32) * inv_T      # student logits / T
    yt = yt_ref[...].astype(jnp.float32) * inv_T      # teacher logits / T

    ys_sh = ys - jnp.max(ys, axis=1, keepdims=True)
    yt_sh = yt - jnp.max(yt, axis=1, keepdims=True)

    denom_s = jnp.sum(jnp.exp(ys_sh), axis=1, keepdims=True)   # student partition
    yt_exp = jnp.exp(yt_sh)
    denom_t = jnp.sum(yt_exp, axis=1, keepdims=True)           # teacher partition

    # row KL = (1/Zt) * sum_c e^{yt_sh}*(yt_sh - ys_sh) + log Zs - log Zt
    cross = jnp.sum(yt_exp * (yt_sh - ys_sh), axis=1, keepdims=True)
    # Exact divide (only tile_rows of them per block) -- no approx-recip bias.
    row_kl = cross / denom_t + (jnp.log(denom_s) - jnp.log(denom_t))

    if mask_rows:
        # Ragged last block: rows >= rows_total contain unspecified data whose
        # exp() can be Inf/NaN -- zero them before the block reduction.  All
        # ops above are strictly within-row, so garbage never crosses rows.
        row0 = pl.program_id(0) * tile_rows
        row_ids = lax.broadcasted_iota(jnp.int32, (tile_rows, 1), 0) + row0
        row_kl = jnp.where(row_ids < rows_total, row_kl, 0.0)

    block_kl = jnp.sum(row_kl) * T * T
    # Lane-dense (1, 8, 128) block per grid step (unmasked vst); wrapper reads
    # element [i, 0, 0].
    out_ref[...] = jnp.full(out_ref.shape, block_kl, dtype=out_ref.dtype)


def _vmem_config():
    """(vmem_limit_bytes, working-set budget) per TPU generation."""
    try:
        phys = int(pltpu.get_tpu_info().vmem_capacity_bytes)
    except Exception:
        phys = 0
    if phys > 64 * 1024 * 1024:
        # v5e / v6e class: 128 MiB physical VMEM -> raise the scoped limit and
        # allow bigger tiles (matters for large-C vocab-level distillation).
        return 64 * 1024 * 1024, 44 * 1024 * 1024
    # v7x class (64 MiB physical per TensorCore) or unknown: stay conservative;
    # at 3.2 TB/s HBM the pipeline reaches roofline at smaller tiles anyway.
    return 48 * 1024 * 1024, 34 * 1024 * 1024


def _choose_tile_rows(batch, n_classes, itemsize, budget, max_tile_rows=None):
    """Largest batch tile whose full VMEM working set stays within budget,
    capped so the grid has >= 2 blocks whenever the batch can be split on
    sublane granularity (keeps both v7x TensorCores busy)."""
    sub = 8 if itemsize >= 4 else (16 if itemsize == 2 else 32)
    # Per-row bytes: 2 inputs x 2 pipeline buffers x itemsize, plus the live
    # f32 compute temporaries (single tile).
    row_bytes = n_classes * (4 * itemsize + _N_F32_TEMPS * 4)
    cap = max(budget // row_bytes, 1)
    if max_tile_rows is not None:
        cap = min(cap, max_tile_rows)

    if batch <= sub:
        # Too small to split into sublane-aligned blocks: one block whose
        # shape equals the full array dims (always legal, any B).
        return batch

    # Aim for >= 2 blocks (megacore) and never exceed the VMEM budget.
    half = -(-batch // 2)                 # ceil(batch / 2)
    half = -(-half // sub) * sub          # round up to sublane multiple
    tile = min(cap, half)
    tile = max((tile // sub) * sub, sub)  # round down to sublane multiple
    return tile


def distill_kl(y_s, y_t, temp, *, max_tile_rows=None):
    """y_s, y_t: [B, C] logits (f32/bf16/fp16). temp: scalar. Returns f32 loss."""
    assert y_s.ndim == 2 and y_s.shape == y_t.shape
    B, C = y_s.shape
    itemsize = jnp.dtype(y_s.dtype).itemsize

    vmem_limit, work_budget = _vmem_config()
    tile = _choose_tile_rows(B, C, itemsize, work_budget, max_tile_rows)
    n_blocks = -(-B // tile)
    mask_rows = (B % tile) != 0           # ragged last block -> in-kernel mask
    # Note: for C so large that even a few rows overflow VMEM, the class dim
    # would also need tiling with a two-pass softmax; not needed for typical
    # classification / vocab logit widths.

    # Deep pipelining only when VMEM forces many short tiles (DMA issue
    # latency otherwise exposed between steps) and the extra buffer fits.
    deep = (n_blocks >= 3 and tile <= 64 and
            tile * C * (6 * itemsize + _N_F32_TEMPS * 4) <= work_budget)
    if deep:
        logit_spec = pl.BlockSpec((tile, C), lambda i: (i, 0),
                                  pipeline_mode=pl.Buffered(3))
    else:
        logit_spec = pl.BlockSpec((tile, C), lambda i: (i, 0))

    temp_arr = jnp.asarray(temp, jnp.float32).reshape(1)
    kernel = functools.partial(_distill_kl_kernel, rows_total=B,
                               tile_rows=tile, mask_rows=mask_rows)

    partials = pl.pallas_call(
        kernel,
        out_shape=jax.ShapeDtypeStruct((n_blocks, 8, 128), jnp.float32),
        grid=(n_blocks,),
        in_specs=[
            pl.BlockSpec(memory_space=pltpu.MemorySpace.SMEM),  # temperature
            logit_spec,                                         # student tile
            logit_spec,                                         # teacher tile
        ],
        out_specs=pl.BlockSpec((1, 8, 128), lambda i: (i, 0, 0)),
        compiler_params=pltpu.CompilerParams(
            dimension_semantics=("parallel",),   # independent blocks -> megacore OK
            vmem_limit_bytes=vmem_limit,
        ),
    )(temp_arr, y_s, y_t)

    # Tiny epilogue over n_blocks scalars (batchmean divisor is the real B).
    return jnp.sum(partials[:, 0, 0]) / jnp.float32(B)


def _reference(y_s, y_t, temp):
    T = jnp.float32(temp)
    ys = y_s.astype(jnp.float32) / T
    yt = y_t.astype(jnp.float32) / T
    log_p = jax.nn.log_softmax(ys, axis=1)
    log_q = jax.nn.log_softmax(yt, axis=1)
    q = jnp.exp(log_q)
    kl = jnp.sum(q * (log_q - log_p))
    return kl / y_s.shape[0] * T * T


if __name__ == "__main__":
    key = jax.random.PRNGKey(0)
    k1, k2, k3, k4, k5, k6 = jax.random.split(key, 6)
    temp = jnp.float32(4.0)

    # Case 1: f32, small batch -> single-block path (block == full array dims).
    B, C = 8, 128
    y_s = jax.random.normal(k1, (B, C), dtype=jnp.float32)
    y_t = jax.random.normal(k2, (B, C), dtype=jnp.float32)
    out = distill_kl(y_s, y_t, temp)
    jax.block_until_ready(out)
    ref = _reference(y_s, y_t, temp)
    assert jnp.allclose(out, ref, atol=2e-3, rtol=2e-3), (out, ref)

    # Case 2: ragged batch (no wrapper pad; in-kernel row mask), multi-block
    # grid, and a non-128-multiple class dim (full-dim escape).
    B2, C2 = 20, 160
    y_s2 = jax.random.normal(k3, (B2, C2), dtype=jnp.float32)
    y_t2 = jax.random.normal(k4, (B2, C2), dtype=jnp.float32)
    out2 = distill_kl(y_s2, y_t2, temp, max_tile_rows=8)
    jax.block_until_ready(out2)
    ref2 = _reference(y_s2, y_t2, temp)
    assert jnp.allclose(out2, ref2, atol=2e-3, rtol=2e-3), (out2, ref2)

    # Case 3: bf16 logits (half the HBM traffic; kernel upcasts internally).
    y_s3 = y_s.astype(jnp.bfloat16)
    y_t3 = y_t.astype(jnp.bfloat16)
    out3 = distill_kl(y_s3, y_t3, temp)
    jax.block_until_ready(out3)
    ref3 = _reference(y_s3, y_t3, temp)
    assert jnp.allclose(out3, ref3, atol=5e-3, rtol=5e-3), (out3, ref3)

    # Case 4: forced small tiles + ragged edge -> exercises the Buffered(3)
    # deep-pipelining path together with the in-kernel row mask.
    B4, C4 = 60, 2048
    y_s4 = jax.random.normal(k5, (B4, C4), dtype=jnp.float32)
    y_t4 = jax.random.normal(k6, (B4, C4), dtype=jnp.float32)
    out4 = distill_kl(y_s4, y_t4, temp, max_tile_rows=16)
    jax.block_until_ready(out4)
    ref4 = _reference(y_s4, y_t4, temp)
    assert jnp.allclose(out4, ref4, atol=2e-3, rtol=2e-3), (out4, ref4)

    print("KERNEL_OK")
</pallas_src>

<mosaic_0001>
module attributes {stable_mosaic.version = 11 : i64} {
  func.func @_distill_kl_kernel(%arg0: i32, %arg1: memref<1xf32, #tpu.memory_space<smem>>, %arg2: memref<8x128xf32, #tpu.memory_space<vmem>>, %arg3: memref<8x128xf32, #tpu.memory_space<vmem>>, %arg4: memref<1x8x128xf32, #tpu.memory_space<vmem>>) attributes {dimension_semantics = [#tpu.dimension_semantics<parallel>], iteration_bounds = array<i64: 1>, scalar_prefetch = 0 : i64, scratch_operands = 0 : i64, tpu.core_type = #tpu.core_type<tc>, window_params = [{transform_indices = @transform_0, window_bounds = array<i64: 1>}, {transform_indices = @transform_1, window_bounds = array<i64: 8, 128>}, {transform_indices = @transform_2, window_bounds = array<i64: 8, 128>}, {transform_indices = @transform_3, window_bounds = array<i64: 1, 8, 128>}]} {
    %c0 = arith.constant 0 : index
    %0 = memref.load %arg1[%c0] : memref<1xf32, #tpu.memory_space<smem>>
    %cst = arith.constant 1.000000e+00 : f32
    %1 = arith.divf %cst, %0 : f32
    %c0_0 = arith.constant 0 : index
    %c0_1 = arith.constant 0 : index
    %2 = vector.load %arg2[%c0_0, %c0_1] : memref<8x128xf32, #tpu.memory_space<vmem>>, vector<8x128xf32>
    %3 = vector.broadcast %1 : f32 to vector<8x128xf32>
    %4 = arith.mulf %2, %3 : vector<8x128xf32>
    %c0_2 = arith.constant 0 : index
    %c0_3 = arith.constant 0 : index
    %5 = vector.load %arg3[%c0_2, %c0_3] : memref<8x128xf32, #tpu.memory_space<vmem>>, vector<8x128xf32>
    %6 = vector.broadcast %1 : f32 to vector<8x128xf32>
    %7 = arith.mulf %5, %6 : vector<8x128xf32>
    %cst_4 = arith.constant dense<0xFF800000> : vector<8xf32>
    %8 = vector.multi_reduction <maximumf>, %4, %cst_4 [1] : vector<8x128xf32> to vector<8xf32>
    %9 = vector.shape_cast %8 : vector<8xf32> to vector<8x1xf32>
    %10 = vector.broadcast %9 : vector<8x1xf32> to vector<8x128xf32>
    %11 = arith.subf %4, %10 : vector<8x128xf32>
    %cst_5 = arith.constant dense<0xFF800000> : vector<8xf32>
    %12 = vector.multi_reduction <maximumf>, %7, %cst_5 [1] : vector<8x128xf32> to vector<8xf32>
    %13 = vector.shape_cast %12 : vector<8xf32> to vector<8x1xf32>
    %14 = vector.broadcast %13 : vector<8x1xf32> to vector<8x128xf32>
    %15 = arith.subf %7, %14 : vector<8x128xf32>
    %16 = math.exp %11 : vector<8x128xf32>
    %cst_6 = arith.constant dense<0.000000e+00> : vector<8xf32>
    %17 = vector.multi_reduction <add>, %16, %cst_6 [1] : vector<8x128xf32> to vector<8xf32>
    %18 = vector.shape_cast %17 : vector<8xf32> to vector<8x1xf32>
    %19 = math.exp %15 : vector<8x128xf32>
    %cst_7 = arith.constant dense<0.000000e+00> : vector<8xf32>
    %20 = vector.multi_reduction <add>, %19, %cst_7 [1] : vector<8x128xf32> to vector<8xf32>
    %21 = vector.shape_cast %20 : vector<8xf32> to vector<8x1xf32>
    %22 = arith.subf %15, %11 : vector<8x128xf32>
    %23 = arith.mulf %19, %22 : vector<8x128xf32>
    %cst_8 = arith.constant dense<0.000000e+00> : vector<8xf32>
    %24 = vector.multi_reduction <add>, %23, %cst_8 [1] : vector<8x128xf32> to vector<8xf32>
    %25 = vector.shape_cast %24 : vector<8xf32> to vector<8x1xf32>
    %26 = arith.divf %25, %21 : vector<8x1xf32>
    %27 = math.log %18 : vector<8x1xf32>
    %28 = math.log %21 : vector<8x1xf32>
    %29 = arith.subf %27, %28 : vector<8x1xf32>
    %30 = arith.addf %26, %29 : vector<8x1xf32>
    %31 = vector.shape_cast %30 : vector<8x1xf32> to vector<1x8x1xf32>
    %cst_9 = arith.constant dense<0.000000e+00> : vector<1xf32>
    %32 = vector.multi_reduction <add>, %31, %cst_9 [1, 2] : vector<1x8x1xf32> to vector<1xf32>
    %33 = vector.shape_cast %32 : vector<1xf32> to vector<1x1x1xf32>
    %34 = vector.extract %33[0, 0, 0] : f32 from vector<1x1x1xf32>
    %35 = arith.mulf %34, %0 : f32
    %36 = arith.mulf %35, %0 : f32
    %37 = vector.broadcast %36 : f32 to vector<1x8x128xf32>
    %c0_10 = arith.constant 0 : index
    %c0_11 = arith.constant 0 : index
    %c0_12 = arith.constant 0 : index
    %38 = vector.load %arg4[%c0_10, %c0_11, %c0_12] : memref<1x8x128xf32, #tpu.memory_space<vmem>>, vector<1x8x128xf32>
    tpu.vector_store %arg4[%c0_10, %c0_11, %c0_12], %37 {strides = array<i32>} : memref<1x8x128xf32, #tpu.memory_space<vmem>>, vector<1x8x128xf32>,
    return
  }
  func.func @transform_0(%arg0: i32) -> i32 {
    %c0_i32 = arith.constant 0 : i32
    %c0_i32_0 = arith.constant 0 : i32
    return %c0_i32 : i32
  }
  func.func @transform_1(%arg0: i32) -> (i32, i32) {
    %c0_i32 = arith.constant 0 : i32
    %c0_i32_0 = arith.constant 0 : i32
    return %arg0, %c0_i32 : i32, i32
  }
  func.func @transform_2(%arg0: i32) -> (i32, i32) {
    %c0_i32 = arith.constant 0 : i32
    %c0_i32_0 = arith.constant 0 : i32
    return %arg0, %c0_i32 : i32, i32
  }
  func.func @transform_3(%arg0: i32) -> (i32, i32, i32) {
    %c0_i32 = arith.constant 0 : i32
    %c0_i32_0 = arith.constant 0 : i32
    %c0_i32_1 = arith.constant 0 : i32
    return %arg0, %c0_i32, %c0_i32_0 : i32, i32, i32
  }
}

</mosaic_0001>

<bundles_post_ra>
// kernel: tpu_custom_call.1
= control target key start
LH: loop header
LB: loop body
LE: loop exit
PB: predicated region body
PF: predicated region fallthrough
CT: control target
= control target key end

     0   :  { %9 = vsyncpa [#allocation4], 0  ;;  %s265_s0 = inlined_call_operand.<no memory space> [shape: f32[1], index: 0, kind: input, shape index: {}]   ;;  %s266_s1 = inlined_call_operand.hbm [shape: f32[8,128], index: 1, kind: input, shape index: {}]   ;;  %s267_s2 = inlined_call_operand.hbm [shape: f32[8,128], index: 2, kind: input, shape index: {}]   ;;  %s268_s3 = inlined_call_operand.hbm [shape: f32[1,8,128], index: 3, kind: output, shape index: {}]  }
   0x1   :  { %10 = vsyncpa [#allocation7], 0 }
   0x2   :  { %11 = vsyncpa [#allocation5], 0  ;;  %s197_s12 = smov [#allocation3]   ;;  %s198_s14 = smov [#allocation6]  }
   0x3   :  { %s20_s13 = sshll.u32 %s197_s12, 4  ;;  %s30_s15 = sshll.u32 %s198_s14, 4  ;;  %s21_s13 = int_to_ptr.vmem [resolvable:$true] %s20_s13  ;;  %s31_s15 = int_to_ptr.vmem [resolvable:$true] %s30_s15 }
   0x4   :  { %s125_s18 = scalar_lea.hbm %s266_s1, 128 }
   0x5   :  { %p126_p0 = scmp.ne.s32.totalorder %s266_s1, %s125_s18  ;;  %p129_p1 = scmp.lt.u32.totalorder %s125_s18, %s266_s1 }
   0x7   :  { %p131_p2 = pnand %p129_p1, %p126_p0 }
   0x9   :  { %134 = shalt.err (!%p131_p2)
}
   0xa   :  { %s135_s23 = scalar_lea.vmem %s21_s13, 128  ;;  %p140_p4 = scmp.lt.s32.totalorder %s21_s13, %s21_s13 }
   0xb   :  { %p136_p3 = scmp.ne.s32.totalorder %s21_s13, %s135_s23  ;;  %p141_p5 = scmp.lt.s32.totalorder %s135_s23, %s135_s23 }
   0xd   :  { %p142_p6 = por %p141_p5, %p140_p4 }
   0xf   :  { %p143_p7 = pnand %p142_p6, %p136_p3 }
  0x11   :  { %146 = shalt.err (!%p143_p7)
}
  0x12   :  { %23 = dma.hbm_to_vmem [thread:$0]  %s266_s1, 128, %s21_s13, [#allocation4]  }
  0x13   :  { %s147_s28 = scalar_lea.hbm %s267_s2, 128 }
  0x14   :  { %p148_p8 = scmp.ne.s32.totalorder %s267_s2, %s147_s28  ;;  %p151_p9 = scmp.lt.u32.totalorder %s147_s28, %s267_s2 }
  0x16   :  { %p153_p10 = pnand %p151_p9, %p148_p8 }
  0x18   :  { %156 = shalt.err (!%p153_p10)
}
  0x19   :  { %s157_s6 = scalar_lea.vmem %s31_s15, 128  ;;  %p162_p12 = scmp.lt.s32.totalorder %s31_s15, %s31_s15 }
  0x1a   :  { %p158_p11 = scmp.ne.s32.totalorder %s31_s15, %s157_s6  ;;  %p163_p13 = scmp.lt.s32.totalorder %s157_s6, %s157_s6 }
  0x1c   :  { %p164_p0 = por %p163_p13, %p162_p12 }
  0x1e   :  { %p165_p1 = pnand %p164_p0, %p158_p11 }
  0x20   :  { %168 = shalt.err (!%p165_p1)
}
  0x21   :  { %33 = dma.hbm_to_vmem [thread:$0]  %s267_s2, 128, %s31_s15, [#allocation7]  }
  0x22   :  { %191 = dma.done.wait [#allocation4], 128  }
  0x23   :  { %192 = vsyncadd [#allocation4], 4294967168  ;;  %v41_v0 = vstv %s265_s0 }
  0x24   :  { %193 = dma.done.wait [#allocation7], 128  }
  0x25   :  { %194 = vsyncadd [#allocation7], 4294967168  ;;  %113 = vrcp.f32 %v41_v0  ;;  %v44_v2 = vld [vmem:[#allocation3] sm:$0xff]  ;;  %v47_v5 = vld [vmem:[#allocation6] sm:$0xff]  ;;  %vm75_vm0 = vcmask 7168   ;;  %s199_s14 = smov [#allocation8]  }
  0x26   :  { %s96_s15 = sshll.u32 %s199_s14, 4  ;;  %s97_s15 = int_to_ptr.vmem [resolvable:$true] %s96_s15 }
  0x27   :  { %s169_s19 = scalar_lea.vmem %s97_s15, 128  ;;  %p174_p3 = scmp.lt.s32.totalorder %s97_s15, %s97_s15 }
  0x28   :  { %p170_p2 = scmp.ne.s32.totalorder %s97_s15, %s169_s19  ;;  %p175_p4 = scmp.lt.s32.totalorder %s169_s19, %s169_s19 }
  0x2a   :  { %p176_p5 = por %p175_p4, %p174_p3 }
  0x2c   :  { %p177_p6 = pnand %p176_p5, %p170_p2 }
  0x2f   :  { %v114_v1 = vpop.eup %113 }
  0x30   :  { %106 = vpush %v114_v1 }
  0x61   :  { %s107_s10 = spop %106 }
  0x62   :  { %v45_v3 = vstv %s107_s10 }
  0x63   :  { %v46_v4 = vmul.f32 %v45_v3, %v44_v2  ;;  %v48_v6 = vmul.f32 %v47_v5, %v45_v3 }
  0x65   :  { %49 = vmax.xlane.f32.xlu0 %v46_v4 }
  0x69   :  { %52 = vmax.xlane.f32.xlu0 %v48_v6 }
  0xf2   :  { %v50_v7 = vpop.xlane.xlu0 %49 }
  0xf3   :  { %v51_v8 = vsub.f32 %v46_v4, %v50_v7 }
  0xf5   :  { %v55_v9 = vmul.f32 1.442695, %v51_v8 }
  0xf6   :  { %v53_v10 = vpop.xlane.xlu0 %52 }
  0xf7   :  { %v54_v11 = vsub.f32 %v48_v6, %v53_v10  ;;  %115 = vpow2.f32 %v55_v9 }
  0xf9   :  { %v59_v12 = vmul.f32 1.442695, %v54_v11  ;;  %v63_v14 = vsub.f32 %v54_v11, %v51_v8 }
  0xfb   :  { %117 = vpow2.f32 %v59_v12 }
 0x101   :  { %v116_v13 = vpop.eup %115 }
 0x102   :  { %57 = vadd.xlane.f32.xlu1 %v116_v13 }
 0x105   :  { %v118_v15 = vpop.eup %117 }
 0x106   :  { %61 = vadd.xlane.f32.xlu1 %v118_v15  ;;  %v64_v16 = vmul.f32 %v118_v15, %v63_v14 }
 0x108   :  { %65 = vadd.xlane.f32.xlu0 %v64_v16 }
 0x18f   :  { %v58_v17 = vpop.xlane.xlu1 %57 }
 0x190   :  { %119 = vlog2.f32 %v58_v17 }
 0x193   :  { %v62_v18 = vpop.xlane.xlu1 %61 }
 0x194   :  { %121 = vrcp.f32 %v62_v18 }
 0x195   :  { %123 = vlog2.f32 %v62_v18  ;;  %v66_v24 = vpop.xlane.xlu0 %65 }
 0x19a   :  { %v120_v19 = vpop.eup %119 }
 0x19b   :  { %v70_v22 = vmul.f32 0.6931472, %v120_v19 }
 0x19e   :  { %v122_v20 = vpop.eup %121 }
 0x19f   :  { %v124_v21 = vpop.eup %123  ;;  %v68_v25 = vmul.f32 %v122_v20, %v66_v24 }
 0x1a0   :  { %v72_v23 = vmul.f32 0.6931472, %v124_v21 }
 0x1a2   :  { %v73_v26 = vsub.f32 %v70_v22, %v72_v23 }
 0x1a4   :  { %v74_v27 = vadd.f32 %v73_v26, %v68_v25 }
 0x1a6   :  { %v76_v28 = vsel %vm75_vm0, %v74_v27, 0.0 }
 0x1a7   :  { %77 = vadd.xlane.f32.xlu1 %v76_v28 }
 0x234   :  { %v78_v29 = vpop.xlane.xlu1 %77 }
 0x235   :  { %v79_v30 = vrot.slane %v78_v29, 4 }
 0x237   :  { %v80_v31 = vadd.f32 %v79_v30, %v78_v29 }
 0x239   :  { %v81_v32 = vrot.slane %v80_v31, 2 }
 0x23b   :  { %v82_v33 = vadd.f32 %v81_v32, %v80_v31 }
 0x23d   :  { %v83_v34 = vrot.slane %v82_v33, 1 }
 0x23f   :  { %v84_v35 = vadd.f32 %v83_v34, %v82_v33 }
 0x241   :  { %108 = vpush %v84_v35 }
 0x272   :  { %s109_s2 = spop %108 }
 0x273   :  { %s86_s13 = smul.f32 %s109_s2, %s265_s0 }
 0x275   :  { %s87_s18 = smul.f32 %s86_s13, %s265_s0 }
 0x277   :  { %v88_v36 = vstv %s87_s18 }
 0x278   :  { %89 = vst [vmem:[#allocation8] sm:$0xff] %v88_v36 }
 0x279   :  { %180 = shalt.err (!%p177_p6)
}
 0x27a   :  { %s181_s22 = scalar_lea.hbm %s268_s3, 128 }
 0x27b   :  { %p182_p7 = scmp.ne.s32.totalorder %s268_s3, %s181_s22  ;;  %p185_p8 = scmp.lt.u32.totalorder %s181_s22, %s268_s3 }
 0x27d   :  { %p187_p9 = pnand %p185_p8, %p182_p7 }
 0x27f   :  { %190 = shalt.err (!%p187_p9)
}
 0x280   :  { %99 = dma.vmem_to_hbm [thread:$0]  %s97_s15, 128, %s268_s3, [#allocation5]  }
 0x281   :  { %195 = dma.done.wait [#allocation5], 128  }
 0x282   :  { %196 = vsyncadd [#allocation5], 4294967168 }
 0x283   :  { %103 = vsyncpa [#allocation4], 1 }
 0x284   :  { %104 = vsyncpa [#allocation7], 1 }
 0x285   :  { %105 = vsyncpa [#allocation5], 1 }

</bundles_post_ra>
